<compile_context>
chip_gen: v5e
topology: v5e:2x2
jax: 0.10.0
libtpu: 0.0.40
codegen_flags: <defaults>
</compile_context>

<pallas_src>
import functools

import jax
import jax.numpy as jnp
from jax.experimental import pallas as pl
from jax.experimental.pallas import tpu as pltpu


def _round_up(x, m):
    return (x + m - 1) // m * m


def _dcnn_kernel(*refs, training: bool):
    if training:
        (x_ref, w1_ref, b1_ref, w2_ref, b2_ref, w3_ref, b3_ref,
         m1_ref, m2_ref, o_ref) = refs
    else:
        (x_ref, w1_ref, b1_ref, w2_ref, b2_ref, w3_ref, b3_ref, o_ref) = refs
        m1_ref = m2_ref = None

    x = x_ref[...]

    # fc: Linear -> ReLU -> Dropout
    h1 = jnp.dot(x, w1_ref[...], preferred_element_type=jnp.float32)
    h1 = jnp.maximum(h1 + b1_ref[...], 0.0)
    if training:
        h1 = h1 * m1_ref[...]          # pre-scaled keep mask: 0 or 1/(1-p)

    # fc2: Linear -> ReLU -> Dropout
    h2 = jnp.dot(h1, w2_ref[...], preferred_element_type=jnp.float32)
    h2 = jnp.maximum(h2 + b2_ref[...], 0.0)
    if training:
        h2 = h2 * m2_ref[...]

    # last: Linear
    out = jnp.dot(h2, w3_ref[...], preferred_element_type=jnp.float32) + b3_ref[...]
    o_ref[...] = out.astype(o_ref.dtype)


def dcnn_forward(x, params, *, dropout_masks=None, tm_max=256):
    """Fused DCNN forward.

    x: (M, in_channels) f32
    params: dict with w1 (K,64), b1 (64,), w2 (64,32), b2 (32,), w3 (32,C), b3 (C,)
    dropout_masks: None (eval mode) or a pair of pre-scaled keep masks
                   (mask1 (M,64), mask2 (M,32)) for training mode.
    """
    w1, b1, w2, b2, w3, b3 = (params[k] for k in ("w1", "b1", "w2", "b2", "w3", "b3"))
    M, K = x.shape
    H1 = w1.shape[1]
    H2 = w2.shape[1]
    C = w3.shape[1]
    training = dropout_masks is not None

    # Batch tile: one big block for small batches, 256-row tiles otherwise
    # (>= 2 grid blocks for large batches -> both v7x TensorCores get work).
    tm = tm_max if M >= tm_max else _round_up(M, 8)
    Mp = _round_up(M, tm)

    if Mp != M:
        pad = Mp - M
        x = jnp.pad(x, ((0, pad), (0, 0)))
        if training:
            m1, m2 = dropout_masks
            dropout_masks = (jnp.pad(m1, ((0, pad), (0, 0))),
                             jnp.pad(m2, ((0, pad), (0, 0))))

    b1r = b1.reshape(1, H1)
    b2r = b2.reshape(1, H2)
    b3r = b3.reshape(1, C)

    in_specs = [
        pl.BlockSpec((tm, K), lambda i: (i, 0)),
        pl.BlockSpec((K, H1), lambda i: (0, 0)),
        pl.BlockSpec((1, H1), lambda i: (0, 0)),
        pl.BlockSpec((H1, H2), lambda i: (0, 0)),
        pl.BlockSpec((1, H2), lambda i: (0, 0)),
        pl.BlockSpec((H2, C), lambda i: (0, 0)),
        pl.BlockSpec((1, C), lambda i: (0, 0)),
    ]
    inputs = [x, w1, b1r, w2, b2r, w3, b3r]
    if training:
        in_specs += [
            pl.BlockSpec((tm, H1), lambda i: (i, 0)),
            pl.BlockSpec((tm, H2), lambda i: (i, 0)),
        ]
        inputs += list(dropout_masks)

    flops = 2 * Mp * (K * H1 + H1 * H2 + H2 * C)
    bytes_accessed = 4 * (Mp * K + K * H1 + H1 * H2 + H2 * C
                          + Mp * C + H1 + H2 + C
                          + (Mp * (H1 + H2) if training else 0))
    cost = pl.CostEstimate(flops=flops, transcendentals=0,
                           bytes_accessed=bytes_accessed)

    kernel = functools.partial(_dcnn_kernel, training=training)

    out = pl.pallas_call(
        kernel,
        out_shape=jax.ShapeDtypeStruct((Mp, C), x.dtype),
        grid=(Mp // tm,),
        in_specs=in_specs,
        out_specs=pl.BlockSpec((tm, C), lambda i: (i, 0)),
        compiler_params=pltpu.CompilerParams(
            dimension_semantics=("parallel",)),
        cost_estimate=cost,
    )(*inputs)

    return out[:M]


def make_dropout_masks(key, batch, p1, p2, h1=64, h2=32):
    """Pre-scaled keep masks matching torch dropout semantics (p == drop prob)."""
    k1, k2 = jax.random.split(key)
    m1 = jax.random.bernoulli(k1, 1.0 - p1, (batch, h1)).astype(jnp.float32) / (1.0 - p1)
    m2 = jax.random.bernoulli(k2, 1.0 - p2, (batch, h2)).astype(jnp.float32) / (1.0 - p2)
    return m1, m2


def _init_linear(key, fan_in, fan_out):
    """Deterministic init mimicking nn.Linear: U(-1/sqrt(fan_in), 1/sqrt(fan_in)).
    Stored as (in, out) so the kernel computes x @ W (== x @ W_torch.T)."""
    kw, kb = jax.random.split(key)
    bound = 1.0 / (fan_in ** 0.5)
    w = jax.random.uniform(kw, (fan_in, fan_out), minval=-bound, maxval=bound,
                           dtype=jnp.float32)
    b = jax.random.uniform(kb, (fan_out,), minval=-bound, maxval=bound,
                           dtype=jnp.float32)
    return w, b


def init_dcnn_params(key, in_channels, out_classes):
    k1, k2, k3 = jax.random.split(key, 3)
    w1, b1 = _init_linear(k1, in_channels, 64)
    w2, b2 = _init_linear(k2, 64, 32)
    w3, b3 = _init_linear(k3, 32, out_classes)
    return dict(w1=w1, b1=b1, w2=w2, b2=b2, w3=w3, b3=b3)


def dcnn_reference(x, params, dropout_masks=None):
    """Pure-JAX reference (HIGHEST precision so f32 matmuls match the MXU path)."""
    hp = jax.lax.Precision.HIGHEST
    h1 = jnp.maximum(jnp.dot(x, params["w1"], precision=hp) + params["b1"], 0.0)
    if dropout_masks is not None:
        h1 = h1 * dropout_masks[0]
    h2 = jnp.maximum(jnp.dot(h1, params["w2"], precision=hp) + params["b2"], 0.0)
    if dropout_masks is not None:
        h2 = h2 * dropout_masks[1]
    return jnp.dot(h2, params["w3"], precision=hp) + params["b3"]


if __name__ == "__main__":
    key = jax.random.PRNGKey(0)
    k_x, k_p, k_d = jax.random.split(key, 3)

    batch = 16
    in_channels = 128
    out_classes = 10
    dropout_chance = 0.25

    x = jax.random.normal(k_x, (batch, in_channels), dtype=jnp.float32)
    params = init_dcnn_params(k_p, in_channels, out_classes)

    # Eval mode (dropout = identity), checked against the pure-JAX reference.
    y_eval = jax.block_until_ready(dcnn_forward(x, params))
    assert y_eval.shape == (batch, out_classes)
    assert jnp.allclose(y_eval, dcnn_reference(x, params), atol=1e-4, rtol=1e-4)

    # Training mode: explicit dropout masks, so the result is exactly checkable.
    masks = make_dropout_masks(k_d, batch, dropout_chance, dropout_chance)
    y_train = jax.block_until_ready(dcnn_forward(x, params, dropout_masks=masks))
    assert y_train.shape == (batch, out_classes)
    assert jnp.allclose(y_train, dcnn_reference(x, params, masks),
                        atol=1e-4, rtol=1e-4)

    print("KERNEL_OK")
</pallas_src>

<mosaic_0001>
module attributes {stable_mosaic.version = 11 : i64} {
  func.func @_dcnn_kernel(%arg0: i32, %arg1: memref<16x128xf32, #tpu.memory_space<vmem>>, %arg2: memref<128x64xf32, #tpu.memory_space<vmem>>, %arg3: memref<1x64xf32, #tpu.memory_space<vmem>>, %arg4: memref<64x32xf32, #tpu.memory_space<vmem>>, %arg5: memref<1x32xf32, #tpu.memory_space<vmem>>, %arg6: memref<32x10xf32, #tpu.memory_space<vmem>>, %arg7: memref<1x10xf32, #tpu.memory_space<vmem>>, %arg8: memref<16x10xf32, #tpu.memory_space<vmem>>) attributes {dimension_semantics = [#tpu.dimension_semantics<parallel>], iteration_bounds = array<i64: 1>, scalar_prefetch = 0 : i64, scratch_operands = 0 : i64, tpu.core_type = #tpu.core_type<tc>, window_params = [{transform_indices = @transform_0, window_bounds = array<i64: 16, 128>}, {pipeline_mode = #tpu.pipeline_mode<synchronous>, transform_indices = @transform_1, window_bounds = array<i64: 128, 64>}, {pipeline_mode = #tpu.pipeline_mode<synchronous>, transform_indices = @transform_2, window_bounds = array<i64: 1, 64>}, {pipeline_mode = #tpu.pipeline_mode<synchronous>, transform_indices = @transform_3, window_bounds = array<i64: 64, 32>}, {pipeline_mode = #tpu.pipeline_mode<synchronous>, transform_indices = @transform_4, window_bounds = array<i64: 1, 32>}, {pipeline_mode = #tpu.pipeline_mode<synchronous>, transform_indices = @transform_5, window_bounds = array<i64: 32, 10>}, {pipeline_mode = #tpu.pipeline_mode<synchronous>, transform_indices = @transform_6, window_bounds = array<i64: 1, 10>}, {transform_indices = @transform_7, window_bounds = array<i64: 16, 10>}]} {
    %c0 = arith.constant 0 : index
    %c0_0 = arith.constant 0 : index
    %0 = vector.load %arg1[%c0, %c0_0] : memref<16x128xf32, #tpu.memory_space<vmem>>, vector<16x128xf32>
    %c0_1 = arith.constant 0 : index
    %c0_2 = arith.constant 0 : index
    %1 = vector.load %arg2[%c0_1, %c0_2] : memref<128x64xf32, #tpu.memory_space<vmem>>, vector<128x64xf32>
    %cst = arith.constant dense<0.000000e+00> : vector<16x64xf32>
    %2 = tpu.matmul %0, %1, %cst {dimension_numbers = #tpu.dot_dimension_numbers<[1], [0], [0], [1], [0, 0, 1, 1], [], []>} : vector<16x128xf32>, vector<128x64xf32>, vector<16x64xf32> -> vector<16x64xf32>
    %c0_3 = arith.constant 0 : index
    %c0_4 = arith.constant 0 : index
    %3 = vector.load %arg3[%c0_3, %c0_4] : memref<1x64xf32, #tpu.memory_space<vmem>>, vector<1x64xf32>
    %4 = vector.broadcast %3 : vector<1x64xf32> to vector<16x64xf32>
    %5 = arith.addf %2, %4 : vector<16x64xf32>
    %cst_5 = arith.constant 0.000000e+00 : f32
    %6 = vector.broadcast %cst_5 : f32 to vector<16x64xf32>
    %7 = arith.maximumf %5, %6 : vector<16x64xf32>
    %c0_6 = arith.constant 0 : index
    %c0_7 = arith.constant 0 : index
    %8 = vector.load %arg4[%c0_6, %c0_7] : memref<64x32xf32, #tpu.memory_space<vmem>>, vector<64x32xf32>
    %cst_8 = arith.constant dense<0.000000e+00> : vector<16x32xf32>
    %9 = tpu.matmul %7, %8, %cst_8 {dimension_numbers = #tpu.dot_dimension_numbers<[1], [0], [0], [1], [0, 0, 1, 1], [], []>} : vector<16x64xf32>, vector<64x32xf32>, vector<16x32xf32> -> vector<16x32xf32>
    %c0_9 = arith.constant 0 : index
    %c0_10 = arith.constant 0 : index
    %10 = vector.load %arg5[%c0_9, %c0_10] : memref<1x32xf32, #tpu.memory_space<vmem>>, vector<1x32xf32>
    %11 = vector.broadcast %10 : vector<1x32xf32> to vector<16x32xf32>
    %12 = arith.addf %9, %11 : vector<16x32xf32>
    %cst_11 = arith.constant 0.000000e+00 : f32
    %13 = vector.broadcast %cst_11 : f32 to vector<16x32xf32>
    %14 = arith.maximumf %12, %13 : vector<16x32xf32>
    %c0_12 = arith.constant 0 : index
    %c0_13 = arith.constant 0 : index
    %15 = vector.load %arg6[%c0_12, %c0_13] : memref<32x10xf32, #tpu.memory_space<vmem>>, vector<32x10xf32>
    %cst_14 = arith.constant dense<0.000000e+00> : vector<16x10xf32>
    %16 = tpu.matmul %14, %15, %cst_14 {dimension_numbers = #tpu.dot_dimension_numbers<[1], [0], [0], [1], [0, 0, 1, 1], [], []>} : vector<16x32xf32>, vector<32x10xf32>, vector<16x10xf32> -> vector<16x10xf32>
    %c0_15 = arith.constant 0 : index
    %c0_16 = arith.constant 0 : index
    %17 = vector.load %arg7[%c0_15, %c0_16] : memref<1x10xf32, #tpu.memory_space<vmem>>, vector<1x10xf32>
    %18 = vector.broadcast %17 : vector<1x10xf32> to vector<16x10xf32>
    %19 = arith.addf %16, %18 : vector<16x10xf32>
    %c0_17 = arith.constant 0 : index
    %c0_18 = arith.constant 0 : index
    %20 = vector.load %arg8[%c0_17, %c0_18] : memref<16x10xf32, #tpu.memory_space<vmem>>, vector<16x10xf32>
    tpu.vector_store %arg8[%c0_17, %c0_18], %19 {strides = array<i32>} : memref<16x10xf32, #tpu.memory_space<vmem>>, vector<16x10xf32>,
    return
  }
  func.func @transform_0(%arg0: i32) -> (i32, i32) {
    %c0_i32 = arith.constant 0 : i32
    %c0_i32_0 = arith.constant 0 : i32
    return %arg0, %c0_i32 : i32, i32
  }
  func.func @transform_1(%arg0: i32) -> (i32, i32) {
    %c0_i32 = arith.constant 0 : i32
    %c0_i32_0 = arith.constant 0 : i32
    %c0_i32_1 = arith.constant 0 : i32
    return %c0_i32, %c0_i32_0 : i32, i32
  }
  func.func @transform_2(%arg0: i32) -> (i32, i32) {
    %c0_i32 = arith.constant 0 : i32
    %c0_i32_0 = arith.constant 0 : i32
    %c0_i32_1 = arith.constant 0 : i32
    return %c0_i32, %c0_i32_0 : i32, i32
  }
  func.func @transform_3(%arg0: i32) -> (i32, i32) {
    %c0_i32 = arith.constant 0 : i32
    %c0_i32_0 = arith.constant 0 : i32
    %c0_i32_1 = arith.constant 0 : i32
    return %c0_i32, %c0_i32_0 : i32, i32
  }
  func.func @transform_4(%arg0: i32) -> (i32, i32) {
    %c0_i32 = arith.constant 0 : i32
    %c0_i32_0 = arith.constant 0 : i32
    %c0_i32_1 = arith.constant 0 : i32
    return %c0_i32, %c0_i32_0 : i32, i32
  }
  func.func @transform_5(%arg0: i32) -> (i32, i32) {
    %c0_i32 = arith.constant 0 : i32
    %c0_i32_0 = arith.constant 0 : i32
    %c0_i32_1 = arith.constant 0 : i32
    return %c0_i32, %c0_i32_0 : i32, i32
  }
  func.func @transform_6(%arg0: i32) -> (i32, i32) {
    %c0_i32 = arith.constant 0 : i32
    %c0_i32_0 = arith.constant 0 : i32
    %c0_i32_1 = arith.constant 0 : i32
    return %c0_i32, %c0_i32_0 : i32, i32
  }
  func.func @transform_7(%arg0: i32) -> (i32, i32) {
    %c0_i32 = arith.constant 0 : i32
    %c0_i32_0 = arith.constant 0 : i32
    return %arg0, %c0_i32 : i32, i32
  }
}

</mosaic_0001>

<bundles_post_ra>
// kernel: tpu_custom_call.1
= control target key start
LH: loop header
LB: loop body
LE: loop exit
PB: predicated region body
PF: predicated region fallthrough
CT: control target
= control target key end

     0   :  { %s374_s0 = inlined_call_operand.vmem [shape: f32[16,128], index: 0, kind: input, shape index: {}]   ;;  %s375_s1 = inlined_call_operand.vmem [shape: f32[128,64], index: 1, kind: input, shape index: {}]   ;;  %s376_s2 = inlined_call_operand.vmem [shape: f32[1,64], index: 2, kind: input, shape index: {}]   ;;  %s377_s3 = inlined_call_operand.vmem [shape: f32[64,32], index: 3, kind: input, shape index: {}]   ;;  %s378_s4 = inlined_call_operand.vmem [shape: f32[1,32], index: 4, kind: input, shape index: {}]   ;;  %s379_s5 = inlined_call_operand.vmem [shape: f32[32,10], index: 5, kind: input, shape index: {}]   ;;  %s380_s6 = inlined_call_operand.vmem [shape: f32[1,10], index: 6, kind: input, shape index: {}]   ;;  %s381_s7 = inlined_call_operand.hbm [shape: f32[16,10], index: 7, kind: output, shape index: {}]  }
   0x1   :  { %v44_v0 = vld [vmem:[%s375_s1 + $0x78] sm:$0xff]  ;;  %v43_v1 = vld [vmem:[%s375_s1 + $0x70] sm:$0xff]  ;;  %v42_v2 = vld [vmem:[%s375_s1 + $0x68] sm:$0xff] }
   0x2   :  { %49 = vmatpush.msra.mxu0 %v44_v0  ;;  %181 = vmatpush.msra.mxu3 %v44_v0  ;;  %v41_v3 = vld [vmem:[%s375_s1 + $0x60] sm:$0xff]  ;;  %v40_v4 = vld [vmem:[%s375_s1 + $0x58] sm:$0xff]  ;;  %v80_v6 = vld [vmem:[%s377_s3 + $0x30] sm:$0xff] }
   0x3   :  { %v81_v5 = vld [vmem:[%s377_s3 + $0x38] sm:$0xff]  ;;  %v39_v7 = vld [vmem:[%s375_s1 + $0x50] sm:$0xff]  ;;  %v79_v8 = vld [vmem:[%s377_s3 + $0x28] sm:$0xff] }
   0x4   :  { %50 = vmatpush.msra.mxu0 %v43_v1  ;;  %182 = vmatpush.msra.mxu3 %v43_v1 }
   0x5   :  { %101 = vmatpush.msra.mxu1 %v81_v5 }
   0x6   :  { %51 = vmatpush.msra.mxu0 %v42_v2  ;;  %183 = vmatpush.msra.mxu3 %v42_v2 }
   0x8   :  { %52 = vmatpush.msra.mxu0 %v41_v3  ;;  %184 = vmatpush.msra.mxu3 %v41_v3 }
   0xa   :  { %53 = vmatpush.msra.mxu0 %v40_v4  ;;  %185 = vmatpush.msra.mxu3 %v40_v4 }
   0xb   :  { %12 = vsyncpa [#allocation3], 0  ;;  %v38_v9 = vld [vmem:[%s375_s1 + $0x48] sm:$0xff]  ;;  %102 = vmatpush.msra.mxu1 %v80_v6  ;;  %v78_v10 = vld [vmem:[%s377_s3 + $0x20] sm:$0xff]  ;;  %vm86_vm0 = vcmask 523264   ;;  %vm126_vm1 = vcmask 261120  }
   0xc   :  { %54 = vmatpush.msra.mxu0 %v39_v7  ;;  %186 = vmatpush.msra.mxu3 %v39_v7  ;;  %v37_v11 = vld [vmem:[%s375_s1 + $0x40] sm:$0xff]  ;;  %v77_v12 = vld [vmem:[%s377_s3 + $0x18] sm:$0xff]  ;;  %v35_v14 = vld [vmem:[%s375_s1 + $0x30] sm:$0xff]  ;;  %vm156_vm2 = vcmask 80896   ;;  %s165_s19 = sshll.u32 %s381_s7, 4  ;;  %s230_s20 = smov 128   ;;  %s166_s19 = int_to_ptr.hbm [resolvable:$true] %s165_s19 }
   0xd   :  { %103 = vmatpush.msra.mxu1 %v79_v8  ;;  %v36_v13 = vld [vmem:[%s375_s1 + $0x38] sm:$0xff]  ;;  %v34_v15 = vld [vmem:[%s375_s1 + $0x28] sm:$0xff]  ;;  %v33_v16 = vld [vmem:[%s375_s1 + $0x20] sm:$0xff]  ;;  %s231_s21 = smov 8  }
   0xe   :  { %55 = vmatpush.msra.mxu0 %v38_v9  ;;  %187 = vmatpush.msra.mxu3 %v38_v9  ;;  %v32_v17 = vld [vmem:[%s375_s1 + $0x18] sm:$0xff]  ;;  %v31_v18 = vld [vmem:[%s375_s1 + $0x10] sm:$0xff]  ;;  %v30_v19 = vld [vmem:[%s375_s1 + $0x8] sm:$0xff] }
   0xf   :  { %104 = vmatpush.msra.mxu1 %v78_v10  ;;  %v29_v20 = vld [vmem:[%s375_s1] sm:$0xff]  ;;  %v28_v22 = vld [vmem:[%s374_s0 + $0x8] sm:$0xff]  ;;  %v76_v23 = vld [vmem:[%s377_s3 + $0x10] sm:$0xff] }
  0x10   :  { %56 = vmatpush.msra.mxu0 %v37_v11  ;;  %188 = vmatpush.msra.mxu3 %v37_v11  ;;  %v27_v21 = vld [vmem:[%s374_s0] sm:$0xff]  ;;  %v75_v24 = vld [vmem:[%s377_s3 + $0x8] sm:$0xff]  ;;  %v121_v26 = vld [vmem:[%s379_s5 + $0x18] sm:$0xff] }
  0x11   :  { %105 = vmatpush.msra.mxu1 %v77_v12  ;;  %v74_v25 = vld [vmem:[%s377_s3] sm:$0xff]  ;;  %145 = vmatpush.msra.mxu2 %v121_v26  ;;  %v120_v34 = vld [vmem:[%s379_s5 + $0x10] sm:$0xff]  ;;  %v119_v35 = vld [vmem:[%s379_s5 + $0x8] sm:$0xff] }
  0x12   :  { %57 = vmatpush.msra.mxu0 %v36_v13  ;;  %189 = vmatpush.msra.mxu3 %v36_v13  ;;  %v200_v27 = vld [vmem:[%s376_s2] ss:$0 sm:$0xff] }
  0x13   :  { %106 = vmatpush.msra.mxu1 %v76_v23  ;;  %146 = vmatpush.msra.mxu2 %v120_v34  ;;  %v118_v36 = vld [vmem:[%s379_s5] sm:$0xff]  ;;  %s229_s5 = smov [#allocation2]  }
  0x14   :  { %58 = vmatpush.msra.mxu0 %v35_v14  ;;  %190 = vmatpush.msra.mxu3 %v35_v14  ;;  %v201_v37 = vld [vmem:[%s378_s4] ss:$0 sm:$0xff]  ;;  %s163_s17 = sshll.u32 %s229_s5, 4  ;;  %s164_s17 = int_to_ptr.vmem [resolvable:$true] %s163_s17 }
  0x15   :  { %107 = vmatpush.msra.mxu1 %v75_v24  ;;  %147 = vmatpush.msra.mxu2 %v119_v35  ;;  %v202_v44 = vld [vmem:[%s380_s6] ss:$0 sm:$0xff] }
  0x16   :  { %59 = vmatpush.msra.mxu0 %v34_v15  ;;  %191 = vmatpush.msra.mxu3 %v34_v15 }
  0x17   :  { %108 = vmatpush.msra.mxu1 %v74_v25  ;;  %148 = vmatpush.msra.mxu2 %v118_v36 }
  0x18   :  { %60 = vmatpush.msra.mxu0 %v33_v16  ;;  %192 = vmatpush.msra.mxu3 %v33_v16 }
  0x1a   :  { %61 = vmatpush.msra.mxu0 %v32_v17  ;;  %193 = vmatpush.msra.mxu3 %v32_v17 }
  0x1c   :  { %62 = vmatpush.msra.mxu0 %v31_v18  ;;  %194 = vmatpush.msra.mxu3 %v31_v18 }
  0x1e   :  { %63 = vmatpush.msra.mxu0 %v30_v19  ;;  %195 = vmatpush.msra.mxu3 %v30_v19 }
  0x20   :  { %64 = vmatpush.msra.mxu0 %v29_v20  ;;  %196 = vmatpush.msra.mxu3 %v29_v20 }
  0x21   :  { %65 = vmatmul.f32.vlgmr.msra.gmra.mxu0 %v27_v21  ;;  %68 = vmatmul.f32.vlgmr.msra.gmra.mxu3 %v28_v22 }
  0x9e   :  { %v66_v28 = vpop.f32.mrf.mxu0 }
  0x9f   :  { %v67_v29 = vadd.f32 %v200_v27, %v66_v28 }
  0xa1   :  { %v72_v30 = vmax.f32 %v67_v29, 0.0 }
  0xa3   :  { %177 = vmatmul.msk.f32.vlgmr.msra.gmra.mxu1 %vm86_vm0, %v72_v30 }
  0xa4   :  { %v69_v31 = vpop.f32.mrf.mxu3 }
  0xa5   :  { %v70_v32 = vadd.f32 %v200_v27, %v69_v31 }
  0xa7   :  { %v73_v33 = vmax.f32 %v70_v32, 0.0 }
  0xab   :  { %178 = vmatmul.msk.f32.gmra.mxu1 %vm86_vm0, %v73_v33 }
 0x120   :  { %v110_v38 = vpop.f32.mrf.mxu1 }
 0x121   :  { %v111_v39 = vadd.f32 %v201_v37, %v110_v38 }
 0x123   :  { %v116_v40 = vmax.f32 %v111_v39, 0.0 }
 0x125   :  { %179 = vmatmul.msk.f32.vlgmr.msra.gmra.mxu2 %vm126_vm1, %v116_v40 }
 0x128   :  { %v113_v41 = vpop.f32.mrf.mxu1 }
 0x129   :  { %v114_v42 = vadd.f32 %v201_v37, %v113_v41 }
 0x12b   :  { %v117_v43 = vmax.f32 %v114_v42, 0.0 }
 0x12d   :  { %180 = vmatmul.msk.f32.gmra.mxu2 %vm126_vm1, %v117_v43 }
 0x1a8   :  { %v150_v45 = vpop.f32.mrf.mxu2 }
 0x1a9   :  { %v151_v46 = vadd.f32 %v202_v44, %v150_v45 }
 0x1ab   :  { %157 = vst.msk [vmem:[#allocation2] sm:$0xff] %vm156_vm2, %v151_v46 }
 0x1b0   :  { %v153_v47 = vpop.f32.mrf.mxu2 }
 0x1b1   :  { %v154_v48 = vadd.f32 %v202_v44, %v153_v47 }
 0x1b3   :  { %158 = vst.msk [vmem:[#allocation2 + $0x8] sm:$0xff] %vm156_vm2, %v154_v48 }
 0x1b4   :  { %171 = dma.vmem_to_hbm [thread:$0]  %s164_s17, 256, %s166_s19, [#allocation3], %s230_s20, %s230_s20, %s231_s21  }
 0x1b5   :  { %227 = dma.done.wait [#allocation3], 256  }
 0x1b6   :  { %228 = vsyncadd [#allocation3], 4294967040 }
 0x1b7   :  { %176 = vsyncpa [#allocation3], 1 }

</bundles_post_ra>
